<compile_context>
chip_gen: v5e
topology: v5e:2x2
jax: 0.10.0
libtpu: 0.0.40
codegen_flags: <defaults>
</compile_context>

<pallas_src>
import jax
import jax.numpy as jnp
from jax.experimental import pallas as pl
from jax.experimental.pallas import tpu as pltpu


def identity(x):
    """Identity.forward: the optimal 'kernel' is no kernel at all."""
    return x


def _copy_kernel(x_ref, o_ref):
    # Pure pass-through on the current VMEM tile.
    o_ref[...] = x_ref[...]


_LANE_CANDIDATES = (32768, 16384, 8192, 4096, 2048, 1024, 512, 256, 128)
_BLOCK_BYTE_BUDGET = 4 * 1024 * 1024  # ~4 MiB/block; 2 in + 2 out bufs << VMEM


def _as_lane_dense_2d(x):
    """Reshape to (rows, cols) with cols a large multiple of 128 when possible."""
    total = x.size
    itemsize = x.dtype.itemsize
    sub = max(8, 32 // max(itemsize, 1))  # sublane packing multiple for dtype
    # Prefer the largest lane-dense cols that still leaves >= `sub` rows.
    for c in _LANE_CANDIDATES:
        if total % c == 0 and total // c >= sub:
            return x.reshape(total // c, c)
    # Next best: any lane-dense cols, even with few rows (full-extent rows dim).
    for c in _LANE_CANDIDATES:
        if total % c == 0:
            return x.reshape(total // c, c)
    # Fallback: keep original last dim; full-extent blocks stay legal.
    if x.ndim >= 2:
        return x.reshape(-1, x.shape[-1])
    return x.reshape(1, max(total, 1))


def identity_pallas_copy(x):
    """Pallas copy kernel with the same semantics as Identity.forward."""
    orig_shape = x.shape
    x2 = _as_lane_dense_2d(x)
    rows, cols = x2.shape
    itemsize = x2.dtype.itemsize
    sub = max(8, 32 // max(itemsize, 1))

    # Largest row tile (multiple of `sub`) that fits the per-block byte budget.
    rows_per_budget = max(1, _BLOCK_BYTE_BUDGET // (cols * itemsize))
    max_rows = max(sub, (rows_per_budget // sub) * sub)

    if rows <= max_rows:
        tile_rows = rows  # full-extent block: always a legal BlockSpec
        # Split a large single-block copy into >=2 grid steps so v7x's two
        # TensorCores can share it (neutral on v5e/v6e).
        if rows >= 2 * sub and rows * cols * itemsize >= (512 * 1024):
            half = (rows + 1) // 2
            tile_rows = min(rows, ((half + sub - 1) // sub) * sub)
    else:
        tile_rows = max_rows

    grid = (pl.cdiv(rows, tile_rows),)

    out2 = pl.pallas_call(
        _copy_kernel,
        out_shape=jax.ShapeDtypeStruct((rows, cols), x2.dtype),
        grid_spec=pltpu.PrefetchScalarGridSpec(
            num_scalar_prefetch=0,
            grid=grid,
            in_specs=[pl.BlockSpec((tile_rows, cols), lambda i: (i, 0))],
            out_specs=pl.BlockSpec((tile_rows, cols), lambda i: (i, 0)),
        ),
        cost_estimate=pl.CostEstimate(
            flops=0, transcendentals=0,
            bytes_accessed=2 * x.size * itemsize),
        compiler_params=pltpu.CompilerParams(
            dimension_semantics=("parallel",),
            vmem_limit_bytes=32 * 1024 * 1024),
    )(x2)

    return out2.reshape(orig_shape)


if __name__ == "__main__":
    key = jax.random.PRNGKey(0)
    shape = (2, 4, 16, 16)  # NCHW, consistent with the model's conv tensors
    x = jax.random.normal(key, shape, dtype=jnp.float32)

    # Fast path: Identity is a no-op; the wrapper returns its input directly.
    y_fast = identity(x)
    assert y_fast is x

    # Pallas copy path (kept for API/benchmark parity).
    y = identity_pallas_copy(x)
    y = jax.block_until_ready(y)

    assert y.shape == x.shape and y.dtype == x.dtype
    assert bool(jnp.array_equal(y, x))
    print("KERNEL_OK")
</pallas_src>

<mosaic_0001>
module attributes {stable_mosaic.version = 11 : i64} {
  func.func @_copy_kernel(%arg0: i32, %arg1: memref<8x256xf32, #tpu.memory_space<vmem>>, %arg2: memref<8x256xf32, #tpu.memory_space<vmem>>) attributes {dimension_semantics = [#tpu.dimension_semantics<parallel>], iteration_bounds = array<i64: 1>, scalar_prefetch = 0 : i64, scratch_operands = 0 : i64, tpu.core_type = #tpu.core_type<tc>, window_params = [{transform_indices = @transform_0, window_bounds = array<i64: 8, 256>}, {transform_indices = @transform_1, window_bounds = array<i64: 8, 256>}]} {
    %c0 = arith.constant 0 : index
    %c0_0 = arith.constant 0 : index
    %0 = vector.load %arg1[%c0, %c0_0] : memref<8x256xf32, #tpu.memory_space<vmem>>, vector<8x256xf32>
    %c0_1 = arith.constant 0 : index
    %c0_2 = arith.constant 0 : index
    %1 = vector.load %arg2[%c0_1, %c0_2] : memref<8x256xf32, #tpu.memory_space<vmem>>, vector<8x256xf32>
    tpu.vector_store %arg2[%c0_1, %c0_2], %0 {strides = array<i32>} : memref<8x256xf32, #tpu.memory_space<vmem>>, vector<8x256xf32>,
    return
  }
  func.func @transform_0(%arg0: i32) -> (i32, i32) {
    %c0_i32 = arith.constant 0 : i32
    %c0_i32_0 = arith.constant 0 : i32
    return %arg0, %c0_i32 : i32, i32
  }
  func.func @transform_1(%arg0: i32) -> (i32, i32) {
    %c0_i32 = arith.constant 0 : i32
    %c0_i32_0 = arith.constant 0 : i32
    return %arg0, %c0_i32 : i32, i32
  }
}

</mosaic_0001>

<bundles_post_ra>
// kernel: tpu_custom_call.1
= control target key start
LH: loop header
LB: loop body
LE: loop exit
PB: predicated region body
PF: predicated region fallthrough
CT: control target
= control target key end

     0   :  { %6 = vsyncpa [#allocation3], 0  ;;  %s116_s0 = inlined_call_operand.hbm [shape: f32[8,256], index: 0, kind: input, shape index: {}]   ;;  %s117_s1 = inlined_call_operand.hbm [shape: f32[8,256], index: 1, kind: output, shape index: {}]  }
   0x1   :  { %7 = vsyncpa [#allocation4], 0  ;;  %s13_s8 = sshll.u32 %s116_s0, 4  ;;  %s98_s9 = smov [#allocation2]   ;;  %s14_s8 = int_to_ptr.hbm [resolvable:$true] %s13_s8 }
   0x2   :  { %s15_s10 = sshll.u32 %s98_s9, 4  ;;  %s16_s10 = int_to_ptr.vmem [resolvable:$true] %s15_s10 }
   0x3   :  { %18 = dma.hbm_to_vmem [thread:$0]  %s14_s8, 256, %s16_s10, [#allocation3]  }
   0x4   :  { %94 = dma.done.wait [#allocation3], 256  }
   0x5   :  { %95 = vsyncadd [#allocation3], 4294967040  ;;  %s99_s11 = smov [#allocation5]   ;;  %s34_s15 = sshll.u32 %s117_s1, 4  ;;  %v23_v0 = vld [vmem:[#allocation2] sm:$0xff]  ;;  %v24_v1 = vld [vmem:[#allocation2 + $0x8] sm:$0xff]  ;;  %s35_s15 = int_to_ptr.hbm [resolvable:$true] %s34_s15 }
   0x6   :  { %s32_s12 = sshll.u32 %s99_s11, 4  ;;  %25 = vst [vmem:[#allocation5] sm:$0xff] %v23_v0  ;;  %s33_s12 = int_to_ptr.vmem [resolvable:$true] %s32_s12 }
   0x7   :  { %26 = vst [vmem:[#allocation5 + $0x8] sm:$0xff] %v24_v1 }
   0x8   :  { %37 = dma.vmem_to_hbm [thread:$0]  %s33_s12, 256, %s35_s15, [#allocation4]  }
   0x9   :  { %96 = dma.done.wait [#allocation4], 256  }
   0xa   :  { %97 = vsyncadd [#allocation4], 4294967040 }
   0xb   :  { %42 = vsyncpa [#allocation3], 1 }
   0xc   :  { %43 = vsyncpa [#allocation4], 1 }

</bundles_post_ra>
